<compile_context>
chip_gen: v6e
topology: v6e:2x2x1
jax: 0.10.0
libtpu: 0.0.40
codegen_flags: <defaults>
</compile_context>

<pallas_src>
import jax
import jax.numpy as jnp
from jax.experimental import pallas as pl
from jax.experimental.pallas import tpu as pltpu


def _channel_attention_kernel(x1_ref, x2_ref, pool_ref, expand_ref,
                              w1a_ref, w1b_ref, b1_ref, w2_ref, b2_ref,
                              out_ref):
    x1 = x1_ref[...]                                  # (Nb, L), input dtype
    x2 = x2_ref[...]                                  # (Nb, L)

    # AdaptiveAvgPool2d(1): per-(sample, channel) sum via lane-dense 0/1 GEMM
    # with f32 accumulation (safe for bf16 inputs); 1/HW lives in w1a/w1b.
    s1 = jnp.dot(x1, pool_ref[...], preferred_element_type=jnp.float32)   # (Nb, C)
    s2 = jnp.dot(x2, pool_ref[...], preferred_element_type=jnp.float32)   # (Nb, C)

    # conv1 (1x1) on cat([pool(x1), pool(x2)]): channel concat == sum of two
    # small lane-dense GEMMs (weights pre-split, pre-transposed, pre-scaled).
    h = (jnp.dot(s1, w1a_ref[...], preferred_element_type=jnp.float32)
         + jnp.dot(s2, w1b_ref[...], preferred_element_type=jnp.float32)
         + b1_ref[...])
    h = jnp.maximum(h, 0.0)                           # ReLU

    # conv2 (1x1) + sigmoid -> per-(sample, channel) attention weights (f32).
    a = jnp.dot(h, w2_ref[...], preferred_element_type=jnp.float32) + b2_ref[...]
    a = jax.nn.sigmoid(a)                             # (Nb, Cout)

    # Broadcast each channel weight across its HW lanes with a 0/1 GEMM
    # (single nonzero per output lane -> exact), then keep the big epilogue
    # in the input dtype (no f32 widening of the large slabs).
    a_full = jnp.dot(a.astype(x2.dtype), expand_ref[...])                 # (Nb, L)
    out_ref[...] = (a_full * x2 + x1).astype(out_ref.dtype)


def _pick_block_rows(n_rows, row_bytes, budget_bytes, min_grid=2):
    """Rows per block: divides n_rows, is a multiple of 8 (or all rows),
    fits the VMEM budget; prefers >= min_grid grid steps when possible."""
    max_rows = max(1, budget_bytes // (6 * row_bytes))      # x1+x2+out, 2 bufs
    candidates = [n_rows] + [b for b in range(8, n_rows, 8) if n_rows % b == 0]
    fitting = [b for b in candidates if b <= max_rows] or [min(candidates)]
    multi = [b for b in fitting if n_rows // b >= min_grid]
    return max(multi) if multi else max(fitting)


def channel_attention(x1, x2, w1, b1, w2, b2):
    """x1, x2: (N, C, H, W). w1: (Cout, 2C, 1, 1), w2: (Cout, Cout, 1, 1)."""
    N, C, H, W = x1.shape
    assert x2.shape == x1.shape
    HW = H * W
    CHW = C * HW
    Cout = w2.shape[0]
    assert w1.shape[1] == 2 * C, "conv1 expects channels of cat([x1, x2])"
    # Forward semantics (a * x2 + x1) require the attention vector to have
    # exactly C channels.
    assert Cout == C, "ChannelAttention forward requires out_channels == C"

    dtype = x1.dtype
    itemsize = jnp.dtype(dtype).itemsize

    # Lane-dense sample-per-row layout; pad the row width up to a multiple of
    # 128 only when necessary (no-op for the common case, e.g. 4*16*16=1024).
    L = ((CHW + 127) // 128) * 128
    x1f = x1.reshape(N, CHW)
    x2f = x2.reshape(N, CHW)
    if L != CHW:
        pad = ((0, 0), (0, L - CHW))
        x1f = jnp.pad(x1f, pad)
        x2f = jnp.pad(x2f, pad)

    # 0/1 pooling matrix (lane-group sum) and its transpose (channel expand).
    # Padding lanes map to no channel (all-zero rows/cols), so sums and the
    # broadcast stay exact.
    ch_of_lane = jnp.arange(L, dtype=jnp.int32) // HW
    pool_mat = (ch_of_lane[:, None] ==
                jnp.arange(C, dtype=jnp.int32)[None, :]).astype(dtype)   # (L, C)
    expand_mat = pool_mat.T                                              # (C, L)

    # Pre-split / pre-transpose the 1x1 conv weights; fold the 1/HW of the
    # average pool into conv1 (linear -> exact up to f32 rounding). Keep the
    # tiny conv operands in f32 regardless of the activation dtype.
    inv_hw = jnp.float32(1.0 / HW)
    w1m = w1.reshape(Cout, 2 * C).astype(jnp.float32)
    w1a_t = jnp.transpose(w1m[:, :C]) * inv_hw   # (C, Cout) — acts on sum(x1)
    w1b_t = jnp.transpose(w1m[:, C:]) * inv_hw   # (C, Cout) — acts on sum(x2)
    w2_t = jnp.transpose(w2.reshape(Cout, Cout)).astype(jnp.float32)
    b1r = b1.reshape(1, Cout).astype(jnp.float32)   # lane-axis row vectors
    b2r = b2.reshape(1, Cout).astype(jnp.float32)

    # Block / VMEM budgeting: keep resident block bytes well under the
    # smallest physical VMEM (64 MiB on v7x); raise the scoped limit if the
    # chosen block needs more than the 16/32 MiB defaults.
    row_bytes = L * itemsize
    block_budget = 20 * 1024 * 1024
    nb = _pick_block_rows(N, row_bytes, block_budget)
    grid = (pl.cdiv(N, nb),)

    small_arrays = (pool_mat, expand_mat, w1a_t, w1b_t, w2_t, b1r, b2r)
    small_bytes = sum(a.size * jnp.dtype(a.dtype).itemsize for a in small_arrays)
    resident = 6 * nb * row_bytes + 2 * small_bytes
    vmem_limit = int(min(56 * 1024 * 1024, max(32 * 1024 * 1024, 2 * resident)))

    out = pl.pallas_call(
        _channel_attention_kernel,
        out_shape=jax.ShapeDtypeStruct((N, L), dtype),
        grid_spec=pltpu.PrefetchScalarGridSpec(
            num_scalar_prefetch=0,
            grid=grid,
            in_specs=[
                pl.BlockSpec((nb, L), lambda i: (i, 0)),       # x1 rows
                pl.BlockSpec((nb, L), lambda i: (i, 0)),       # x2 rows
                pl.BlockSpec((L, C), lambda i: (0, 0)),        # pooling matrix
                pl.BlockSpec((C, L), lambda i: (0, 0)),        # expand matrix
                pl.BlockSpec((C, Cout), lambda i: (0, 0)),     # w1a^T / HW
                pl.BlockSpec((C, Cout), lambda i: (0, 0)),     # w1b^T / HW
                pl.BlockSpec((1, Cout), lambda i: (0, 0)),     # b1 (row)
                pl.BlockSpec((Cout, Cout), lambda i: (0, 0)),  # w2^T
                pl.BlockSpec((1, Cout), lambda i: (0, 0)),     # b2 (row)
            ],
            out_specs=pl.BlockSpec((nb, L), lambda i: (i, 0)),
        ),
        compiler_params=pltpu.CompilerParams(
            dimension_semantics=("parallel",),
            vmem_limit_bytes=vmem_limit),
    )(x1f, x2f, pool_mat, expand_mat, w1a_t, w1b_t, b1r, w2_t, b2r)

    if L != CHW:
        out = out[:, :CHW]
    return out.reshape(N, C, H, W)


def reference(x1, x2, w1, b1, w2, b2):
    """Pure-JAX re-implementation of the PyTorch forward for verification."""
    x = jnp.concatenate([x1, x2], axis=1)
    p = jnp.mean(x, axis=(2, 3), keepdims=True)                       # (N, 2C, 1, 1)
    h = jnp.einsum('oc,ncij->noij', w1.reshape(w1.shape[0], -1), p)
    h = jnp.maximum(h + b1.reshape(1, -1, 1, 1), 0.0)
    a = jnp.einsum('oc,ncij->noij', w2.reshape(w2.shape[0], -1), h)
    a = jax.nn.sigmoid(a + b2.reshape(1, -1, 1, 1))
    return a * x2 + x1


if __name__ == "__main__":
    N, C, H, W = 2, 4, 16, 16
    in_channels, out_channels = 2 * C, C   # forward implies out_channels == C

    key = jax.random.PRNGKey(0)
    k1, k2, k3, k4, k5, k6 = jax.random.split(key, 6)

    x1 = jax.random.normal(k1, (N, C, H, W), dtype=jnp.float32)
    x2 = jax.random.normal(k2, (N, C, H, W), dtype=jnp.float32)

    # Deterministic synthetic parameters (Conv2d 1x1 weight/bias shapes).
    w1 = 0.3 * jax.random.normal(k3, (out_channels, in_channels, 1, 1), dtype=jnp.float32)
    b1 = 0.1 * jax.random.normal(k4, (out_channels,), dtype=jnp.float32)
    w2 = 0.3 * jax.random.normal(k5, (out_channels, out_channels, 1, 1), dtype=jnp.float32)
    b2 = 0.1 * jax.random.normal(k6, (out_channels,), dtype=jnp.float32)

    out = channel_attention(x1, x2, w1, b1, w2, b2)
    out = jax.block_until_ready(out)

    ref = reference(x1, x2, w1, b1, w2, b2)
    assert out.shape == (N, C, H, W)
    # Pooling/conv run through the MXU with f32 accumulation; tolerance stays
    # tight for f32 while allowing for the different summation order.
    assert jnp.allclose(out, ref, atol=1e-4, rtol=1e-4), "mismatch vs reference"

    print("KERNEL_OK")
</pallas_src>

<mosaic_0001>
module attributes {stable_mosaic.version = 11 : i64} {
  func.func @_channel_attention_kernel(%arg0: i32, %arg1: memref<2x1024xf32, #tpu.memory_space<vmem>>, %arg2: memref<2x1024xf32, #tpu.memory_space<vmem>>, %arg3: memref<1024x4xf32, #tpu.memory_space<vmem>>, %arg4: memref<4x1024xf32, #tpu.memory_space<vmem>>, %arg5: memref<4x4xf32, #tpu.memory_space<vmem>>, %arg6: memref<4x4xf32, #tpu.memory_space<vmem>>, %arg7: memref<1x4xf32, #tpu.memory_space<vmem>>, %arg8: memref<4x4xf32, #tpu.memory_space<vmem>>, %arg9: memref<1x4xf32, #tpu.memory_space<vmem>>, %arg10: memref<2x1024xf32, #tpu.memory_space<vmem>>) attributes {dimension_semantics = [#tpu.dimension_semantics<parallel>], iteration_bounds = array<i64: 1>, scalar_prefetch = 0 : i64, scratch_operands = 0 : i64, tpu.core_type = #tpu.core_type<tc>, window_params = [{transform_indices = @transform_0, window_bounds = array<i64: 2, 1024>}, {transform_indices = @transform_1, window_bounds = array<i64: 2, 1024>}, {pipeline_mode = #tpu.pipeline_mode<synchronous>, transform_indices = @transform_2, window_bounds = array<i64: 1024, 4>}, {pipeline_mode = #tpu.pipeline_mode<synchronous>, transform_indices = @transform_3, window_bounds = array<i64: 4, 1024>}, {pipeline_mode = #tpu.pipeline_mode<synchronous>, transform_indices = @transform_4, window_bounds = array<i64: 4, 4>}, {pipeline_mode = #tpu.pipeline_mode<synchronous>, transform_indices = @transform_5, window_bounds = array<i64: 4, 4>}, {pipeline_mode = #tpu.pipeline_mode<synchronous>, transform_indices = @transform_6, window_bounds = array<i64: 1, 4>}, {pipeline_mode = #tpu.pipeline_mode<synchronous>, transform_indices = @transform_7, window_bounds = array<i64: 4, 4>}, {pipeline_mode = #tpu.pipeline_mode<synchronous>, transform_indices = @transform_8, window_bounds = array<i64: 1, 4>}, {transform_indices = @transform_9, window_bounds = array<i64: 2, 1024>}]} {
    %c0 = arith.constant 0 : index
    %c0_0 = arith.constant 0 : index
    %0 = vector.load %arg1[%c0, %c0_0] : memref<2x1024xf32, #tpu.memory_space<vmem>>, vector<2x1024xf32>
    %c0_1 = arith.constant 0 : index
    %c0_2 = arith.constant 0 : index
    %1 = vector.load %arg2[%c0_1, %c0_2] : memref<2x1024xf32, #tpu.memory_space<vmem>>, vector<2x1024xf32>
    %c0_3 = arith.constant 0 : index
    %c0_4 = arith.constant 0 : index
    %2 = vector.load %arg3[%c0_3, %c0_4] : memref<1024x4xf32, #tpu.memory_space<vmem>>, vector<1024x4xf32>
    %cst = arith.constant dense<0.000000e+00> : vector<2x4xf32>
    %3 = tpu.matmul %0, %2, %cst {dimension_numbers = #tpu.dot_dimension_numbers<[1], [0], [0], [1], [0, 0, 1, 1], [], []>} : vector<2x1024xf32>, vector<1024x4xf32>, vector<2x4xf32> -> vector<2x4xf32>
    %c0_5 = arith.constant 0 : index
    %c0_6 = arith.constant 0 : index
    %4 = vector.load %arg3[%c0_5, %c0_6] : memref<1024x4xf32, #tpu.memory_space<vmem>>, vector<1024x4xf32>
    %cst_7 = arith.constant dense<0.000000e+00> : vector<2x4xf32>
    %5 = tpu.matmul %1, %4, %cst_7 {dimension_numbers = #tpu.dot_dimension_numbers<[1], [0], [0], [1], [0, 0, 1, 1], [], []>} : vector<2x1024xf32>, vector<1024x4xf32>, vector<2x4xf32> -> vector<2x4xf32>
    %c0_8 = arith.constant 0 : index
    %c0_9 = arith.constant 0 : index
    %6 = vector.load %arg5[%c0_8, %c0_9] : memref<4x4xf32, #tpu.memory_space<vmem>>, vector<4x4xf32>
    %cst_10 = arith.constant dense<0.000000e+00> : vector<2x4xf32>
    %7 = tpu.matmul %3, %6, %cst_10 {dimension_numbers = #tpu.dot_dimension_numbers<[1], [0], [0], [1], [0, 0, 1, 1], [], []>} : vector<2x4xf32>, vector<4x4xf32>, vector<2x4xf32> -> vector<2x4xf32>
    %c0_11 = arith.constant 0 : index
    %c0_12 = arith.constant 0 : index
    %8 = vector.load %arg6[%c0_11, %c0_12] : memref<4x4xf32, #tpu.memory_space<vmem>>, vector<4x4xf32>
    %cst_13 = arith.constant dense<0.000000e+00> : vector<2x4xf32>
    %9 = tpu.matmul %5, %8, %cst_13 {dimension_numbers = #tpu.dot_dimension_numbers<[1], [0], [0], [1], [0, 0, 1, 1], [], []>} : vector<2x4xf32>, vector<4x4xf32>, vector<2x4xf32> -> vector<2x4xf32>
    %10 = arith.addf %7, %9 : vector<2x4xf32>
    %c0_14 = arith.constant 0 : index
    %c0_15 = arith.constant 0 : index
    %11 = vector.load %arg7[%c0_14, %c0_15] : memref<1x4xf32, #tpu.memory_space<vmem>>, vector<1x4xf32>
    %12 = vector.broadcast %11 : vector<1x4xf32> to vector<2x4xf32>
    %13 = arith.addf %10, %12 : vector<2x4xf32>
    %cst_16 = arith.constant 0.000000e+00 : f32
    %14 = vector.broadcast %cst_16 : f32 to vector<2x4xf32>
    %15 = arith.maximumf %13, %14 : vector<2x4xf32>
    %c0_17 = arith.constant 0 : index
    %c0_18 = arith.constant 0 : index
    %16 = vector.load %arg8[%c0_17, %c0_18] : memref<4x4xf32, #tpu.memory_space<vmem>>, vector<4x4xf32>
    %cst_19 = arith.constant dense<0.000000e+00> : vector<2x4xf32>
    %17 = tpu.matmul %15, %16, %cst_19 {dimension_numbers = #tpu.dot_dimension_numbers<[1], [0], [0], [1], [0, 0, 1, 1], [], []>} : vector<2x4xf32>, vector<4x4xf32>, vector<2x4xf32> -> vector<2x4xf32>
    %c0_20 = arith.constant 0 : index
    %c0_21 = arith.constant 0 : index
    %18 = vector.load %arg9[%c0_20, %c0_21] : memref<1x4xf32, #tpu.memory_space<vmem>>, vector<1x4xf32>
    %19 = vector.broadcast %18 : vector<1x4xf32> to vector<2x4xf32>
    %20 = arith.addf %17, %19 : vector<2x4xf32>
    %21 = arith.negf %20 : vector<2x4xf32>
    %22 = math.exp %21 : vector<2x4xf32>
    %cst_22 = arith.constant 1.000000e+00 : f32
    %23 = vector.broadcast %cst_22 : f32 to vector<2x4xf32>
    %24 = arith.addf %23, %22 : vector<2x4xf32>
    %25 = arith.divf %23, %24 : vector<2x4xf32>
    %c0_23 = arith.constant 0 : index
    %c0_24 = arith.constant 0 : index
    %26 = vector.load %arg4[%c0_23, %c0_24] : memref<4x1024xf32, #tpu.memory_space<vmem>>, vector<4x1024xf32>
    %cst_25 = arith.constant dense<0.000000e+00> : vector<2x1024xf32>
    %27 = tpu.matmul %25, %26, %cst_25 {dimension_numbers = #tpu.dot_dimension_numbers<[1], [0], [0], [1], [0, 0, 1, 1], [], []>} : vector<2x4xf32>, vector<4x1024xf32>, vector<2x1024xf32> -> vector<2x1024xf32>
    %28 = arith.mulf %27, %1 : vector<2x1024xf32>
    %29 = arith.addf %28, %0 : vector<2x1024xf32>
    %c0_26 = arith.constant 0 : index
    %c0_27 = arith.constant 0 : index
    %30 = vector.load %arg10[%c0_26, %c0_27] : memref<2x1024xf32, #tpu.memory_space<vmem>>, vector<2x1024xf32>
    tpu.vector_store %arg10[%c0_26, %c0_27], %29 {strides = array<i32>} : memref<2x1024xf32, #tpu.memory_space<vmem>>, vector<2x1024xf32>,
    return
  }
  func.func @transform_0(%arg0: i32) -> (i32, i32) {
    %c0_i32 = arith.constant 0 : i32
    %c0_i32_0 = arith.constant 0 : i32
    return %arg0, %c0_i32 : i32, i32
  }
  func.func @transform_1(%arg0: i32) -> (i32, i32) {
    %c0_i32 = arith.constant 0 : i32
    %c0_i32_0 = arith.constant 0 : i32
    return %arg0, %c0_i32 : i32, i32
  }
  func.func @transform_2(%arg0: i32) -> (i32, i32) {
    %c0_i32 = arith.constant 0 : i32
    %c0_i32_0 = arith.constant 0 : i32
    %c0_i32_1 = arith.constant 0 : i32
    return %c0_i32, %c0_i32_0 : i32, i32
  }
  func.func @transform_3(%arg0: i32) -> (i32, i32) {
    %c0_i32 = arith.constant 0 : i32
    %c0_i32_0 = arith.constant 0 : i32
    %c0_i32_1 = arith.constant 0 : i32
    return %c0_i32, %c0_i32_0 : i32, i32
  }
  func.func @transform_4(%arg0: i32) -> (i32, i32) {
    %c0_i32 = arith.constant 0 : i32
    %c0_i32_0 = arith.constant 0 : i32
    %c0_i32_1 = arith.constant 0 : i32
    return %c0_i32, %c0_i32_0 : i32, i32
  }
  func.func @transform_5(%arg0: i32) -> (i32, i32) {
    %c0_i32 = arith.constant 0 : i32
    %c0_i32_0 = arith.constant 0 : i32
    %c0_i32_1 = arith.constant 0 : i32
    return %c0_i32, %c0_i32_0 : i32, i32
  }
  func.func @transform_6(%arg0: i32) -> (i32, i32) {
    %c0_i32 = arith.constant 0 : i32
    %c0_i32_0 = arith.constant 0 : i32
    %c0_i32_1 = arith.constant 0 : i32
    return %c0_i32, %c0_i32_0 : i32, i32
  }
  func.func @transform_7(%arg0: i32) -> (i32, i32) {
    %c0_i32 = arith.constant 0 : i32
    %c0_i32_0 = arith.constant 0 : i32
    %c0_i32_1 = arith.constant 0 : i32
    return %c0_i32, %c0_i32_0 : i32, i32
  }
  func.func @transform_8(%arg0: i32) -> (i32, i32) {
    %c0_i32 = arith.constant 0 : i32
    %c0_i32_0 = arith.constant 0 : i32
    %c0_i32_1 = arith.constant 0 : i32
    return %c0_i32, %c0_i32_0 : i32, i32
  }
  func.func @transform_9(%arg0: i32) -> (i32, i32) {
    %c0_i32 = arith.constant 0 : i32
    %c0_i32_0 = arith.constant 0 : i32
    return %arg0, %c0_i32 : i32, i32
  }
}

</mosaic_0001>

<bundles_post_ra>
// kernel: tpu_custom_call.1
= control target key start
LH: loop header
LB: loop body
LE: loop exit
PB: predicated region body
PF: predicated region fallthrough
CT: control target
= control target key end

     0   :  { %v1819_v30 = vmov 1983009808   ;;  %v171_v32 = vlaneseq  ;;  %s2936_s0 = inlined_call_operand.vmem [shape: f32[2,1024], index: 0, kind: input, shape index: {}]   ;;  %s2937_s1 = inlined_call_operand.vmem [shape: f32[2,1024], index: 1, kind: input, shape index: {}]   ;;  %s2938_s2 = inlined_call_operand.vmem [shape: f32[1024,4], index: 2, kind: input, shape index: {}]   ;;  %s2939_s3 = inlined_call_operand.vmem [shape: f32[4,1024], index: 3, kind: input, shape index: {}]   ;;  %s2940_s4 = inlined_call_operand.vmem [shape: f32[4,4], index: 4, kind: input, shape index: {}]   ;;  %s2941_s5 = inlined_call_operand.vmem [shape: f32[4,4], index: 5, kind: input, shape index: {}]   ;;  %s2942_s6 = inlined_call_operand.vmem [shape: f32[1,4], index: 6, kind: input, shape index: {}]   ;;  %s2943_s7 = inlined_call_operand.vmem [shape: f32[4,4], index: 7, kind: input, shape index: {}]   ;;  %s2944_s8 = inlined_call_operand.vmem [shape: f32[1,4], index: 8, kind: input, shape index: {}]   ;;  %s2945_s9 = inlined_call_operand.hbm [shape: f32[2,1024], index: 9, kind: output, shape index: {}]  }
   0x1   :  { %v1876_v0 = vld [vmem:[%s2938_s2 + $0xf8] sm:$0xff]  ;;  %v1898_v4 = vld [vmem:[%s2938_s2 + $0xf0] sm:$0xff]  ;;  %v1920_v8 = vld [vmem:[%s2938_s2 + $0xe8] sm:$0xff]  ;;  %v169_v31 = vunpack.c.l.s4 %v1819_v30 }
   0x2   :  { %v1881_v1 = vld [vmem:[%s2938_s2 + $0x1f8] sm:$0xff]  ;;  %1480 = vmatprep.subr.mxu0 %v1876_v0  ;;  %v1903_v5 = vld [vmem:[%s2938_s2 + $0x1f0] sm:$0xff]  ;;  %v1927_v9 = vld [vmem:[%s2938_s2 + $0x1e8] sm:$0xff]  ;;  %v172_v42 = vshrl.u32 %v171_v32, 7 }
   0x3   :  { %v1886_v2 = vld [vmem:[%s2938_s2 + $0x78] sm:$0xff]  ;;  %1515 = vmatprep.subr.mxu1 %v1881_v1  ;;  %v1910_v6 = vld [vmem:[%s2938_s2 + $0x70] sm:$0xff]  ;;  %v1932_v10 = vld [vmem:[%s2938_s2 + $0x68] sm:$0xff]  ;;  %v170_v41 = vunpack.c.0.s8 %v169_v31 }
   0x4   :  { %v1893_v3 = vld [vmem:[%s2938_s2 + $0x178] sm:$0xff]  ;;  %1481 = vmatpush3.msra.mxu0 %v1886_v2  ;;  %v1915_v7 = vld [vmem:[%s2938_s2 + $0x170] sm:$0xff]  ;;  %v1937_v11 = vld [vmem:[%s2938_s2 + $0x168] sm:$0xff] }
   0x5   :  { %1516 = vmatpush3.msra.mxu1 %v1893_v3  ;;  %1482 = vmatprep.subr.mxu0 %v1898_v4  ;;  %v1944_v12 = vld [vmem:[%s2938_s2 + $0xe0] sm:$0xff]  ;;  %v1968_v16 = vld [vmem:[%s2938_s2 + $0xd8] sm:$0xff]  ;;  %v1992_v20 = vld [vmem:[%s2938_s2 + $0xd0] sm:$0xff]  ;;  %v2143_v51 = vsub.s32 %v170_v41, %v172_v42 }
   0x6   :  { %1517 = vmatprep.subr.mxu1 %v1903_v5  ;;  %1483 = vmatpush3.msra.mxu0 %v1910_v6  ;;  %v1949_v13 = vld [vmem:[%s2938_s2 + $0x1e0] sm:$0xff]  ;;  %v1973_v17 = vld [vmem:[%s2938_s2 + $0x1d8] sm:$0xff]  ;;  %v1997_v21 = vld [vmem:[%s2938_s2 + $0x1d0] sm:$0xff] }
   0x7   :  { %1518 = vmatpush3.msra.mxu1 %v1915_v7  ;;  %1484 = vmatprep.subr.mxu0 %v1920_v8  ;;  %v1956_v14 = vld [vmem:[%s2938_s2 + $0x60] sm:$0xff]  ;;  %v1980_v18 = vld [vmem:[%s2938_s2 + $0x58] sm:$0xff]  ;;  %v2004_v22 = vld [vmem:[%s2938_s2 + $0x50] sm:$0xff] }
   0x8   :  { %1519 = vmatprep.subr.mxu1 %v1927_v9  ;;  %v1961_v15 = vld [vmem:[%s2938_s2 + $0x160] sm:$0xff]  ;;  %1485 = vmatpush3.msra.mxu0 %v1932_v10  ;;  %v1985_v19 = vld [vmem:[%s2938_s2 + $0x158] sm:$0xff]  ;;  %v2009_v23 = vld [vmem:[%s2938_s2 + $0x150] sm:$0xff] }
   0x9   :  { %1520 = vmatpush3.msra.mxu1 %v1937_v11  ;;  %1486 = vmatprep.subr.mxu0 %v1944_v12  ;;  %v2016_v24 = vld [vmem:[%s2938_s2 + $0xc8] sm:$0xff]  ;;  %v2040_v28 = vld [vmem:[%s2938_s2 + $0xc0] sm:$0xff]  ;;  %v2064_v35 = vld [vmem:[%s2938_s2 + $0xb8] sm:$0xff] }
   0xa   :  { %1521 = vmatprep.subr.mxu1 %v1949_v13  ;;  %1487 = vmatpush3.msra.mxu0 %v1956_v14  ;;  %v2021_v25 = vld [vmem:[%s2938_s2 + $0x1c8] sm:$0xff]  ;;  %v2045_v29 = vld [vmem:[%s2938_s2 + $0x1c0] sm:$0xff]  ;;  %v2069_v36 = vld [vmem:[%s2938_s2 + $0x1b8] sm:$0xff] }
   0xb   :  { %1522 = vmatpush3.msra.mxu1 %v1961_v15  ;;  %1488 = vmatprep.subr.mxu0 %v1968_v16  ;;  %v2028_v26 = vld [vmem:[%s2938_s2 + $0x48] sm:$0xff]  ;;  %v2052_v33 = vld [vmem:[%s2938_s2 + $0x40] sm:$0xff]  ;;  %v2076_v37 = vld [vmem:[%s2938_s2 + $0x38] sm:$0xff] }
   0xc   :  { %1523 = vmatprep.subr.mxu1 %v1973_v17  ;;  %1489 = vmatpush3.msra.mxu0 %v1980_v18  ;;  %v2033_v27 = vld [vmem:[%s2938_s2 + $0x148] sm:$0xff]  ;;  %v2057_v34 = vld [vmem:[%s2938_s2 + $0x140] sm:$0xff]  ;;  %v2081_v38 = vld [vmem:[%s2938_s2 + $0x138] sm:$0xff] }
   0xd   :  { %1524 = vmatpush3.msra.mxu1 %v1985_v19  ;;  %1490 = vmatprep.subr.mxu0 %v1992_v20  ;;  %v2088_v39 = vld [vmem:[%s2938_s2 + $0xb0] sm:$0xff]  ;;  %v2112_v45 = vld [vmem:[%s2938_s2 + $0xa8] sm:$0xff]  ;;  %v2136_v49 = vld [vmem:[%s2938_s2 + $0xa0] sm:$0xff] }
   0xe   :  { %1525 = vmatprep.subr.mxu1 %v1997_v21  ;;  %1491 = vmatpush3.msra.mxu0 %v2004_v22  ;;  %v2093_v40 = vld [vmem:[%s2938_s2 + $0x1b0] sm:$0xff]  ;;  %v2117_v46 = vld [vmem:[%s2938_s2 + $0x1a8] sm:$0xff]  ;;  %v2141_v50 = vld [vmem:[%s2938_s2 + $0x1a0] sm:$0xff] }
   0xf   :  { %1526 = vmatpush3.msra.mxu1 %v2009_v23  ;;  %1492 = vmatprep.subr.mxu0 %v2016_v24  ;;  %v2100_v43 = vld [vmem:[%s2938_s2 + $0x30] sm:$0xff]  ;;  %v2124_v47 = vld [vmem:[%s2938_s2 + $0x28] sm:$0xff]  ;;  %v2150_v52 = vld [vmem:[%s2938_s2 + $0x20] sm:$0xff] }
  0x10   :  { %1527 = vmatprep.subr.mxu1 %v2021_v25  ;;  %1493 = vmatpush3.msra.mxu0 %v2028_v26  ;;  %v2105_v44 = vld [vmem:[%s2938_s2 + $0x130] sm:$0xff]  ;;  %v2129_v48 = vld [vmem:[%s2938_s2 + $0x128] sm:$0xff]  ;;  %v2155_v53 = vld [vmem:[%s2938_s2 + $0x120] sm:$0xff] }
  0x11   :  { %1528 = vmatpush3.msra.mxu1 %v2033_v27  ;;  %1494 = vmatprep.subr.mxu0 %v2040_v28  ;;  %v33_v54 = vld [vmem:[%s2936_s0] sm:$0xff]  ;;  %v2165_v55 = vld [vmem:[%s2938_s2 + $0x98] sm:$0xff]  ;;  %v2189_v60 = vld [vmem:[%s2938_s2 + $0x90] sm:$0xff] }
  0x12   :  { %1529 = vmatprep.subr.mxu1 %v2045_v29  ;;  %1495 = vmatpush3.msra.mxu0 %v2052_v33  ;;  %v2170_v56 = vld [vmem:[%s2938_s2 + $0x198] sm:$0xff]  ;;  %v167_v57 = vcombine.high %v33_v54, %v33_v54  ;;  %3020 = vst [vmem:[#allocation6_spill] sm:$0xff] %v2189_v60  ;;  %v2194_v61 = vld [vmem:[%s2938_s2 + $0x190] sm:$0xff]  ;;  %v2197_v62 = vrot.slane %v33_v54, %v2143_v51  ;;  %v2219_v32 = vld [vmem:[%s2938_s2 + $0x88] sm:$0xff] }
  0x13   :  { %1530 = vmatpush3.msra.mxu1 %v2057_v34  ;;  %1496 = vmatprep.subr.mxu0 %v2064_v35  ;;  %v2177_v58 = vld [vmem:[%s2938_s2 + $0x18] sm:$0xff]  ;;  %3021 = vst [vmem:[#allocation7_spill] sm:$0xff] %v2194_v61  ;;  %v2204_v63 = vld [vmem:[%s2938_s2 + $0x10] sm:$0xff]  ;;  %3026 = vst [vmem:[#allocation12_spill] sm:$0xff] %v2219_v32 }
  0x14   :  { %1531 = vmatprep.subr.mxu1 %v2069_v36  ;;  %1497 = vmatpush3.msra.mxu0 %v2076_v37  ;;  %v2182_v59 = vld [vmem:[%s2938_s2 + $0x118] sm:$0xff]  ;;  %3022 = vst [vmem:[#allocation8_spill] sm:$0xff] %v2197_v62  ;;  %3023 = vst [vmem:[#allocation9_spill] sm:$0xff] %v2204_v63  ;;  %v2209_v30 = vld [vmem:[%s2938_s2 + $0x110] sm:$0xff]  ;;  %v2212_v31 = vrot.slane %v167_v57, %v2143_v51 }
  0x15   :  { %1532 = vmatpush3.msra.mxu1 %v2081_v38  ;;  %1498 = vmatprep.subr.mxu0 %v2088_v39  ;;  %3019 = vst [vmem:[#allocation5_spill] sm:$0xff] %v2182_v59  ;;  %3024 = vst [vmem:[#allocation10_spill] sm:$0xff] %v2209_v30  ;;  %v2224_v41 = vld [vmem:[%s2938_s2 + $0x188] sm:$0xff]  ;;  %v2243_v57 = vld [vmem:[%s2938_s2 + $0x80] sm:$0xff] }
  0x16   :  { %1533 = vmatprep.subr.mxu1 %v2093_v40  ;;  %1499 = vmatpush3.msra.mxu0 %v2100_v43  ;;  %3025 = vst [vmem:[#allocation11_spill] sm:$0xff] %v2212_v31  ;;  %3027 = vst [vmem:[#allocation13_spill] sm:$0xff] %v2224_v41  ;;  %v2231_v42 = vld [vmem:[%s2938_s2 + $0x8] sm:$0xff] }
  0x17   :  { %1534 = vmatpush3.msra.mxu1 %v2105_v44  ;;  %1500 = vmatprep.subr.mxu0 %v2112_v45  ;;  %3028 = vst [vmem:[#allocation14_spill] sm:$0xff] %v2231_v42  ;;  %v2236_v54 = vld [vmem:[%s2938_s2 + $0x108] sm:$0xff]  ;;  %3030 = vst [vmem:[#allocation16_spill] sm:$0xff] %v2243_v57 }
  0x18   :  { %1535 = vmatprep.subr.mxu1 %v2117_v46  ;;  %1501 = vmatpush3.msra.mxu0 %v2124_v47  ;;  %3029 = vst [vmem:[#allocation15_spill] sm:$0xff] %v2236_v54 }
  0x19   :  { %1536 = vmatpush3.msra.mxu1 %v2129_v48  ;;  %1502 = vmatprep.subr.mxu0 %v2136_v49 }
  0x1a   :  { %1537 = vmatprep.subr.mxu1 %v2141_v50  ;;  %1503 = vmatpush3.msra.mxu0 %v2150_v52 }
  0x1b   :  { %1538 = vmatpush3.msra.mxu1 %v2155_v53  ;;  %1504 = vmatprep.subr.mxu0 %v2165_v55 }
  0x1c   :  { %1539 = vmatprep.subr.mxu1 %v2170_v56  ;;  %1505 = vmatpush3.msra.mxu0 %v2177_v58 }
  0x1d   :  { %1540 = vmatpush3.msra.mxu1 %v2182_v59  ;;  %1506 = vmatprep.subr.mxu0 %v2189_v60  ;;  %v2252_v60 = vcombine.high %v2197_v62, %v2197_v62  ;;  %v2270_v59 = vld [vmem:[%s2938_s2 + $0x100] sm:$0xff] }
  0x1e   :  { %1541 = vmatprep.subr.mxu1 %v2194_v61  ;;  %1507 = vmatpush3.msra.mxu0 %v2204_v63  ;;  %v2248_v61 = vld [vmem:[%s2938_s2 + $0x180] sm:$0xff]  ;;  %v2263_v63 = vcombine.high %v2212_v31, %v2212_v31  ;;  %3035 = vst [vmem:[#allocation21_spill] sm:$0xff] %v2270_v59 }
  0x1f   :  { %1542 = vmatpush3.msra.mxu1 %v2209_v30  ;;  %3031 = vst [vmem:[#allocation17_spill] sm:$0xff] %v2248_v61  ;;  %3032 = vst [vmem:[#allocation18_spill] sm:$0xff] %v2252_v60  ;;  %1508 = vmatprep.subr.mxu0 %v2219_v32  ;;  %v2259_v30 = vld [vmem:[%s2938_s2] sm:$0xff] }
  0x20   :  { %1543 = vmatprep.subr.mxu1 %v2224_v41  ;;  %3033 = vst [vmem:[#allocation19_spill] sm:$0xff] %v2259_v30  ;;  %3034 = vst [vmem:[#allocation20_spill] sm:$0xff] %v2263_v63  ;;  %1509 = vmatpush3.msra.mxu0 %v2231_v42  ;;  %v2279_v41 = vld [vmem:[%s2938_s2 + $0x2f8] sm:$0xff] }
  0x21   :  { %1544 = vmatpush3.msra.mxu1 %v2236_v54  ;;  %1510 = vmatprep.subr.mxu0 %v2243_v57  ;;  %3036 = vst [vmem:[#allocation22_spill] sm:$0xff] %v2279_v41  ;;  %v2284_v54 = vld [vmem:[%s2938_s2 + $0x3f8] sm:$0xff] }
  0x22   :  { %1545 = vmatprep.subr.mxu1 %v2248_v61  ;;  %1511 = vmatpush3.msra.mxu0 %v2259_v30  ;;  %3037 = vst [vmem:[#allocation23_spill] sm:$0xff] %v2284_v54  ;;  %v2291_v30 = vld [vmem:[%s2938_s2 + $0x278] sm:$0xff] }
  0x23   :  { %273 = vmatprep.mubr.f32.mxu0 %v2252_v60  ;;  %1546 = vmatpush3.msra.mxu1 %v2270_v59  ;;  %3038 = vst [vmem:[#allocation24_spill] sm:$0xff] %v2291_v30  ;;  %v2296_v60 = vld [vmem:[%s2938_s2 + $0x378] sm:$0xff]  ;;  %v2303_v59 = vld [vmem:[%s2938_s2 + $0x2f0] sm:$0xff] }
  0x24   :  { %343 = vmatprep.mubr.f32.mxu1 %v2263_v63  ;;  %3039 = vst [vmem:[#allocation25_spill] sm:$0xff] %v2296_v60  ;;  %274 = vmatmul.mubr.f32.vlgmr.msra.gmra.mxu0 %v2197_v62  ;;  %3040 = vst [vmem:[#allocation26_spill] sm:$0xff] %v2303_v59  ;;  %v2308_v63 = vld [vmem:[%s2938_s2 + $0x3f0] sm:$0xff] }
  0x25   :  { %344 = vmatmul.mubr.f32.vlgmr.msra.gmra.mxu1 %v2212_v31  ;;  %3041 = vst [vmem:[#allocation27_spill] sm:$0xff] %v2308_v63  ;;  %1550 = vmatprep.subr.mxu0 %v2279_v41  ;;  %v2315_v62 = vld [vmem:[%s2938_s2 + $0x270] sm:$0xff]  ;;  %v2327_v41 = vld [vmem:[%s2938_s2 + $0x2e8] sm:$0xff] }
  0x26   :  { %1585 = vmatprep.subr.mxu1 %v2284_v54  ;;  %3042 = vst [vmem:[#allocation28_spill] sm:$0xff] %v2315_v62  ;;  %v2320_v31 = vld [vmem:[%s2938_s2 + $0x370] sm:$0xff]  ;;  %1551 = vmatpush3.msra.mxu0 %v2291_v30  ;;  %3044 = vst [vmem:[#allocation30_spill] sm:$0xff] %v2327_v41  ;;  %v2332_v54 = vld [vmem:[%s2938_s2 + $0x3e8] sm:$0xff] }
  0x27   :  { %3043 = vst [vmem:[#allocation29_spill] sm:$0xff] %v2320_v31  ;;  %1586 = vmatpush3.msra.mxu1 %v2296_v60  ;;  %3045 = vst [vmem:[#allocation31_spill] sm:$0xff] %v2332_v54  ;;  %1552 = vmatprep.subr.mxu0 %v2303_v59  ;;  %v2339_v30 = vld [vmem:[%s2938_s2 + $0x268] sm:$0xff]  ;;  %v2351_v59 = vld [vmem:[%s2938_s2 + $0x2e0] sm:$0xff] }
  0x28   :  { %1587 = vmatprep.subr.mxu1 %v2308_v63  ;;  %3046 = vst [vmem:[#allocation32_spill] sm:$0xff] %v2339_v30  ;;  %v2344_v60 = vld [vmem:[%s2938_s2 + $0x368] sm:$0xff]  ;;  %1553 = vmatpush3.msra.mxu0 %v2315_v62  ;;  %3048 = vst [vmem:[#allocation34_spill] sm:$0xff] %v2351_v59  ;;  %v2356_v63 = vld [vmem:[%s2938_s2 + $0x3e0] sm:$0xff] }
  0x29   :  { %3047 = vst [vmem:[#allocation33_spill] sm:$0xff] %v2344_v60  ;;  %1588 = vmatpush3.msra.mxu1 %v2320_v31  ;;  %3049 = vst [vmem:[#allocation35_spill] sm:$0xff] %v2356_v63  ;;  %1554 = vmatprep.subr.mxu0 %v2327_v41  ;;  %v2363_v62 = vld [vmem:[%s2938_s2 + $0x260] sm:$0xff]  ;;  %v2375_v41 = vld [vmem:[%s2938_s2 + $0x2d8] sm:$0xff] }
  0x2a   :  { %1589 = vmatprep.subr.mxu1 %v2332_v54  ;;  %3050 = vst [vmem:[#allocation36_spill] sm:$0xff] %v2363_v62  ;;  %v2368_v31 = vld [vmem:[%s2938_s2 + $0x360] sm:$0xff]  ;;  %1555 = vmatpush3.msra.mxu0 %v2339_v30  ;;  %3052 = vst [vmem:[#allocation38_spill] sm:$0xff] %v2375_v41  ;;  %v2380_v54 = vld [vmem:[%s2938_s2 + $0x3d8] sm:$0xff] }
  0x2b   :  { %3051 = vst [vmem:[#allocation37_spill] sm:$0xff] %v2368_v31  ;;  %1590 = vmatpush3.msra.mxu1 %v2344_v60  ;;  %3053 = vst [vmem:[#allocation39_spill] sm:$0xff] %v2380_v54  ;;  %1556 = vmatprep.subr.mxu0 %v2351_v59  ;;  %v2387_v30 = vld [vmem:[%s2938_s2 + $0x258] sm:$0xff]  ;;  %v2399_v59 = vld [vmem:[%s2938_s2 + $0x2d0] sm:$0xff] }
  0x2c   :  { %1591 = vmatprep.subr.mxu1 %v2356_v63  ;;  %3054 = vst [vmem:[#allocation40_spill] sm:$0xff] %v2387_v30  ;;  %v2392_v60 = vld [vmem:[%s2938_s2 + $0x358] sm:$0xff]  ;;  %1557 = vmatpush3.msra.mxu0 %v2363_v62  ;;  %3056 = vst [vmem:[#allocation42_spill] sm:$0xff] %v2399_v59  ;;  %v2404_v63 = vld [vmem:[%s2938_s2 + $0x3d0] sm:$0xff] }
  0x2d   :  { %3055 = vst [vmem:[#allocation41_spill] sm:$0xff] %v2392_v60  ;;  %1592 = vmatpush3.msra.mxu1 %v2368_v31  ;;  %3057 = vst [vmem:[#allocation43_spill] sm:$0xff] %v2404_v63  ;;  %1558 = vmatprep.subr.mxu0 %v2375_v41  ;;  %v2411_v62 = vld [vmem:[%s2938_s2 + $0x250] sm:$0xff]  ;;  %v2423_v41 = vld [vmem:[%s2938_s2 + $0x2c8] sm:$0xff] }
  0x2e   :  { %1593 = vmatprep.subr.mxu1 %v2380_v54  ;;  %3058 = vst [vmem:[#allocation44_spill] sm:$0xff] %v2411_v62  ;;  %v2416_v31 = vld [vmem:[%s2938_s2 + $0x350] sm:$0xff]  ;;  %1559 = vmatpush3.msra.mxu0 %v2387_v30  ;;  %3060 = vst [vmem:[#allocation46_spill] sm:$0xff] %v2423_v41  ;;  %v2428_v54 = vld [vmem:[%s2938_s2 + $0x3c8] sm:$0xff] }
  0x2f   :  { %3059 = vst [vmem:[#allocation45_spill] sm:$0xff] %v2416_v31  ;;  %1594 = vmatpush3.msra.mxu1 %v2392_v60  ;;  %3061 = vst [vmem:[#allocation47_spill] sm:$0xff] %v2428_v54 }
  0x30   :  { %14 = vsyncpa [#allocation3], 0  ;;  %1560 = vmatprep.subr.mxu0 %v2399_v59  ;;  %1595 = vmatprep.subr.mxu1 %v2404_v63  ;;  %v2435_v30 = vld [vmem:[%s2938_s2 + $0x248] sm:$0xff]  ;;  %v2447_v59 = vld [vmem:[%s2938_s2 + $0x2c0] sm:$0xff]  ;;  %vm819_vm0 = vcmask 1043456   ;;  %vm1821_vm1 = vmmov 0  }
  0x31   :  { %3062 = vst [vmem:[#allocation48_spill] sm:$0xff] %v2435_v30  ;;  %v2440_v60 = vld [vmem:[%s2938_s2 + $0x348] sm:$0xff]  ;;  %1561 = vmatpush3.msra.mxu0 %v2411_v62  ;;  %1596 = vmatpush3.msra.mxu1 %v2416_v31  ;;  %3064 = vst [vmem:[#allocation50_spill] sm:$0xff] %v2447_v59  ;;  %v2452_v63 = vld [vmem:[%s2938_s2 + $0x3c0] sm:$0xff]  ;;  %vm815_vm2 = vcmask 31744  }
  0x32   :  { %3063 = vst [vmem:[#allocation49_spill] sm:$0xff] %v2440_v60  ;;  %3065 = vst [vmem:[#allocation51_spill] sm:$0xff] %v2452_v63  ;;  %1562 = vmatprep.subr.mxu0 %v2423_v41  ;;  %1597 = vmatprep.subr.mxu1 %v2428_v54  ;;  %v2459_v62 = vld [vmem:[%s2938_s2 + $0x240] sm:$0xff]  ;;  %v2471_v41 = vld [vmem:[%s2938_s2 + $0x2b8] sm:$0xff] }
  0x33   :  { %3066 = vst [vmem:[#allocation52_spill] sm:$0xff] %v2459_v62  ;;  %v2464_v31 = vld [vmem:[%s2938_s2 + $0x340] sm:$0xff]  ;;  %1563 = vmatpush3.msra.mxu0 %v2435_v30  ;;  %1598 = vmatpush3.msra.mxu1 %v2440_v60  ;;  %3068 = vst [vmem:[#allocation54_spill] sm:$0xff] %v2471_v41  ;;  %v2476_v54 = vld [vmem:[%s2938_s2 + $0x3b8] sm:$0xff] }
  0x34   :  { %3067 = vst [vmem:[#allocation53_spill] sm:$0xff] %v2464_v31  ;;  %3069 = vst [vmem:[#allocation55_spill] sm:$0xff] %v2476_v54  ;;  %1564 = vmatprep.subr.mxu0 %v2447_v59  ;;  %1599 = vmatprep.subr.mxu1 %v2452_v63  ;;  %v2483_v30 = vld [vmem:[%s2938_s2 + $0x238] sm:$0xff]  ;;  %v2495_v59 = vld [vmem:[%s2938_s2 + $0x2b0] sm:$0xff] }
  0x35   :  { %3070 = vst [vmem:[#allocation56_spill] sm:$0xff] %v2483_v30  ;;  %v2488_v60 = vld [vmem:[%s2938_s2 + $0x338] sm:$0xff]  ;;  %1565 = vmatpush3.msra.mxu0 %v2459_v62  ;;  %1600 = vmatpush3.msra.mxu1 %v2464_v31  ;;  %3072 = vst [vmem:[#allocation58_spill] sm:$0xff] %v2495_v59  ;;  %v2500_v63 = vld [vmem:[%s2938_s2 + $0x3b0] sm:$0xff] }
  0x36   :  { %3071 = vst [vmem:[#allocation57_spill] sm:$0xff] %v2488_v60  ;;  %3073 = vst [vmem:[#allocation59_spill] sm:$0xff] %v2500_v63  ;;  %1566 = vmatprep.subr.mxu0 %v2471_v41  ;;  %1601 = vmatprep.subr.mxu1 %v2476_v54  ;;  %v2507_v62 = vld [vmem:[%s2938_s2 + $0x230] sm:$0xff]  ;;  %v2519_v41 = vld [vmem:[%s2938_s2 + $0x2a8] sm:$0xff] }
  0x37   :  { %3074 = vst [vmem:[#allocation60_spill] sm:$0xff] %v2507_v62  ;;  %v2512_v31 = vld [vmem:[%s2938_s2 + $0x330] sm:$0xff]  ;;  %1567 = vmatpush3.msra.mxu0 %v2483_v30  ;;  %1602 = vmatpush3.msra.mxu1 %v2488_v60  ;;  %3076 = vst [vmem:[#allocation62_spill] sm:$0xff] %v2519_v41  ;;  %v2524_v54 = vld [vmem:[%s2938_s2 + $0x3a8] sm:$0xff] }
  0x38   :  { %3075 = vst [vmem:[#allocation61_spill] sm:$0xff] %v2512_v31  ;;  %3077 = vst [vmem:[#allocation63_spill] sm:$0xff] %v2524_v54  ;;  %1568 = vmatprep.subr.mxu0 %v2495_v59  ;;  %1603 = vmatprep.subr.mxu1 %v2500_v63  ;;  %v2531_v30 = vld [vmem:[%s2938_s2 + $0x228] sm:$0xff]  ;;  %v2546_v63 = vld [vmem:[%s2938_s2 + $0x2a0] sm:$0xff] }
  0x39   :  { %3078 = vst [vmem:[#allocation64_spill] sm:$0xff] %v2531_v30  ;;  %v2536_v60 = vld [vmem:[%s2938_s2 + $0x328] sm:$0xff]  ;;  %1569 = vmatpush3.msra.mxu0 %v2507_v62  ;;  %1604 = vmatpush3.msra.mxu1 %v2512_v31  ;;  %3080 = vst [vmem:[#allocation66_spill] sm:$0xff] %v2546_v63  ;;  %v2551_v59 = vld [vmem:[%s2938_s2 + $0x3a0] sm:$0xff] }
  0x3a   :  { %3079 = vst [vmem:[#allocation65_spill] sm:$0xff] %v2536_v60  ;;  %v34_v61 = vld [vmem:[%s2936_s0 + $0x8] sm:$0xff]  ;;  %3081 = vst [vmem:[#allocation67_spill] sm:$0xff] %v2551_v59  ;;  %1570 = vmatprep.subr.mxu0 %v2519_v41  ;;  %1605 = vmatprep.subr.mxu1 %v2524_v54  ;;  %v2558_v62 = vld [vmem:[%s2938_s2 + $0x220] sm:$0xff] }
  0x3b   :  { %3082 = vst [vmem:[#allocation68_spill] sm:$0xff] %v2558_v62  ;;  %v2563_v31 = vld [vmem:[%s2938_s2 + $0x320] sm:$0xff]  ;;  %1571 = vmatpush3.msra.mxu0 %v2531_v30  ;;  %1606 = vmatpush3.msra.mxu1 %v2536_v60  ;;  %v2570_v41 = vld [vmem:[%s2938_s2 + $0x298] sm:$0xff]  ;;  %v184_v57 = vcombine.high %v34_v61, %v34_v61  ;;  %v2602_v42 = vrot.slane %v34_v61, %v2143_v51  ;;  %v2621_v61 = vld [vmem:[%s2938_s2 + $0x288] sm:$0xff] }
  0x3c   :  { %3083 = vst [vmem:[#allocation69_spill] sm:$0xff] %v2563_v31  ;;  %3084 = vst [vmem:[#allocation70_spill] sm:$0xff] %v2570_v41  ;;  %v2575_v54 = vld [vmem:[%s2938_s2 + $0x398] sm:$0xff]  ;;  %1572 = vmatprep.subr.mxu0 %v2546_v63  ;;  %1607 = vmatprep.subr.mxu1 %v2551_v59  ;;  %v2594_v63 = vld [vmem:[%s2938_s2 + $0x290] sm:$0xff] }
  0x3d   :  { %3085 = vst [vmem:[#allocation71_spill] sm:$0xff] %v2575_v54  ;;  %v2582_v30 = vld [vmem:[%s2938_s2 + $0x218] sm:$0xff]  ;;  %1573 = vmatpush3.msra.mxu0 %v2558_v62  ;;  %1608 = vmatpush3.msra.mxu1 %v2563_v31  ;;  %3088 = vst [vmem:[#allocation74_spill] sm:$0xff] %v2594_v63  ;;  %v2599_v59 = vld [vmem:[%s2938_s2 + $0x390] sm:$0xff] }
  0x3e   :  { %3086 = vst [vmem:[#allocation72_spill] sm:$0xff] %v2582_v30  ;;  %v2587_v60 = vld [vmem:[%s2938_s2 + $0x318] sm:$0xff]  ;;  %3089 = vst [vmem:[#allocation75_spill] sm:$0xff] %v2599_v59  ;;  %1574 = vmatprep.subr.mxu0 %v2570_v41  ;;  %1609 = vmatprep.subr.mxu1 %v2575_v54  ;;  %v2609_v31 = vld [vmem:[%s2938_s2 + $0x210] sm:$0xff]  ;;  %v2629_v41 = vrot.slane %v184_v57, %v2143_v51 }
  0x3f   :  { %3087 = vst [vmem:[#allocation73_spill] sm:$0xff] %v2587_v60  ;;  %3090 = vst [vmem:[#allocation76_spill] sm:$0xff] %v2609_v31  ;;  %v2614_v62 = vld [vmem:[%s2938_s2 + $0x310] sm:$0xff]  ;;  %1575 = vmatpush3.msra.mxu0 %v2582_v30  ;;  %1610 = vmatpush3.msra.mxu1 %v2587_v60  ;;  %v2626_v54 = vld [vmem:[%s2938_s2 + $0x388] sm:$0xff] }
  0x40   :  { %3091 = vst [vmem:[#allocation77_spill] sm:$0xff] %v2614_v62  ;;  %1576 = vmatprep.subr.mxu0 %v2594_v63  ;;  %1611 = vmatprep.subr.mxu1 %v2599_v59  ;;  %v2636_v60 = vld [vmem:[%s2938_s2 + $0x208] sm:$0xff]  ;;  %v2648_v57 = vld [vmem:[%s2938_s2 + $0x280] sm:$0xff]  ;;  %v2657_v63 = vcombine.high %v2602_v42, %v2602_v42  ;;  %v2675_v32 = vcombine.high %v2629_v41, %v2629_v41 }
  0x41   :  { %v2641_v30 = vld [vmem:[%s2938_s2 + $0x308] sm:$0xff]  ;;  %1577 = vmatpush3.msra.mxu0 %v2609_v31  ;;  %1612 = vmatpush3.msra.mxu1 %v2614_v62  ;;  %v2653_v59 = vld [vmem:[%s2938_s2 + $0x380] sm:$0xff] }
  0x42   :  { %1578 = vmatprep.subr.mxu0 %v2621_v61  ;;  %1613 = vmatprep.subr.mxu1 %v2626_v54  ;;  %v2664_v62 = vld [vmem:[%s2938_s2 + $0x200] sm:$0xff] }
  0x43   :  { %1579 = vmatpush3.msra.mxu0 %v2636_v60  ;;  %1614 = vmatpush3.msra.mxu1 %v2641_v30  ;;  %v2671_v31 = vld [vmem:[%s2938_s2 + $0x300] sm:$0xff] }
  0x44   :  { %1580 = vmatprep.subr.mxu0 %v2648_v57  ;;  %1615 = vmatprep.subr.mxu1 %v2653_v59 }
  0x45   :  { %1581 = vmatpush3.msra.mxu0 %v2664_v62  ;;  %413 = vmatprep.mubr.f32.mxu0 %v2657_v63 }
  0x46   :  { %1616 = vmatpush3.msra.mxu1 %v2671_v31  ;;  %414 = vmatmul.mubr.f32.vlgmr.msra.gmra.mxu0 %v2602_v42 }
  0x47   :  { %483 = vmatprep.mubr.f32.mxu1 %v2675_v32  ;;  %1620 = vmatprep.subr.mxu0 %v1876_v0  ;;  %v35_v0 = vld [vmem:[%s2937_s1] sm:$0xff] }
  0x48   :  { %1655 = vmatprep.subr.mxu1 %v1881_v1  ;;  %484 = vmatmul.mubr.f32.vlgmr.msra.gmra.mxu1 %v2629_v41  ;;  %v491_v1 = vcombine.high %v35_v0, %v35_v0 }
  0x49   :  { %1621 = vmatpush3.msra.mxu0 %v1886_v2  ;;  %1656 = vmatpush3.msra.mxu1 %v1893_v3  ;;  %v2737_v2 = vrot.slane %v35_v0, %v2143_v51  ;;  %v3137_v0 = vld [vmem:[#allocation54_spill] sm:$0xff] }
  0x4a   :  { %1622 = vmatprep.subr.mxu0 %v1898_v4  ;;  %1657 = vmatprep.subr.mxu1 %v1903_v5  ;;  %v2742_v3 = vrot.slane %v491_v1, %v2143_v51  ;;  %v3092_v4 = vld [vmem:[#allocation5_spill] sm:$0xff]  ;;  %v3093_v5 = vld [vmem:[#allocation6_spill] sm:$0xff]  ;;  %v3138_v1 = vld [vmem:[#allocation55_spill] sm:$0xff] }
  0x4b   :  { %1623 = vmatpush3.msra.mxu0 %v1910_v6  ;;  %1658 = vmatpush3.msra.mxu1 %v1915_v7  ;;  %v3094_v6 = vld [vmem:[#allocation7_spill] sm:$0xff]  ;;  %v3095_v7 = vld [vmem:[#allocation9_spill] sm:$0xff] }
  0x4c   :  { %1624 = vmatprep.subr.mxu0 %v1920_v8  ;;  %1659 = vmatprep.subr.mxu1 %v1927_v9  ;;  %v3096_v8 = vld [vmem:[#allocation10_spill] sm:$0xff]  ;;  %v2752_v9 = vcombine.high %v2737_v2, %v2737_v2 }
  0x4d   :  { %1625 = vmatpush3.msra.mxu0 %v1932_v10  ;;  %1660 = vmatpush3.msra.mxu1 %v1937_v11  ;;  %v3097_v10 = vld [vmem:[#allocation12_spill] sm:$0xff]  ;;  %v3098_v11 = vld [vmem:[#allocation13_spill] sm:$0xff] }
  0x4e   :  { %1626 = vmatprep.subr.mxu0 %v1944_v12  ;;  %1661 = vmatprep.subr.mxu1 %v1949_v13  ;;  %v2758_v12 = vcombine.high %v2742_v3, %v2742_v3  ;;  %v3099_v13 = vld [vmem:[#allocation14_spill] sm:$0xff] }
  0x4f   :  { %1627 = vmatpush3.msra.mxu0 %v1956_v14  ;;  %1662 = vmatpush3.msra.mxu1 %v1961_v15  ;;  %v3100_v14 = vld [vmem:[#allocation15_spill] sm:$0xff]  ;;  %v3101_v15 = vld [vmem:[#allocation16_spill] sm:$0xff] }
  0x50   :  { %1628 = vmatprep.subr.mxu0 %v1968_v16  ;;  %1663 = vmatprep.subr.mxu1 %v1973_v17  ;;  %v3102_v16 = vld [vmem:[#allocation17_spill] sm:$0xff]  ;;  %v3103_v17 = vld [vmem:[#allocation19_spill] sm:$0xff] }
  0x51   :  { %1629 = vmatpush3.msra.mxu0 %v1980_v18  ;;  %1664 = vmatpush3.msra.mxu1 %v1985_v19  ;;  %v3104_v18 = vld [vmem:[#allocation21_spill] sm:$0xff]  ;;  %v3105_v19 = vld [vmem:[#allocation22_spill] sm:$0xff] }
  0x52   :  { %1630 = vmatprep.subr.mxu0 %v1992_v20  ;;  %1665 = vmatprep.subr.mxu1 %v1997_v21  ;;  %v3106_v20 = vld [vmem:[#allocation23_spill] sm:$0xff]  ;;  %v3107_v21 = vld [vmem:[#allocation24_spill] sm:$0xff] }
  0x53   :  { %1631 = vmatpush3.msra.mxu0 %v2004_v22  ;;  %1666 = vmatpush3.msra.mxu1 %v2009_v23  ;;  %v3108_v22 = vld [vmem:[#allocation25_spill] sm:$0xff]  ;;  %v3109_v23 = vld [vmem:[#allocation26_spill] sm:$0xff] }
  0x54   :  { %1632 = vmatprep.subr.mxu0 %v2016_v24  ;;  %1667 = vmatprep.subr.mxu1 %v2021_v25  ;;  %v3110_v24 = vld [vmem:[#allocation27_spill] sm:$0xff]  ;;  %v3111_v25 = vld [vmem:[#allocation28_spill] sm:$0xff] }
  0x55   :  { %1633 = vmatpush3.msra.mxu0 %v2028_v26  ;;  %1668 = vmatpush3.msra.mxu1 %v2033_v27  ;;  %v3112_v26 = vld [vmem:[#allocation29_spill] sm:$0xff]  ;;  %v3113_v27 = vld [vmem:[#allocation30_spill] sm:$0xff] }
  0x56   :  { %1634 = vmatprep.subr.mxu0 %v2040_v28  ;;  %1669 = vmatprep.subr.mxu1 %v2045_v29  ;;  %v3114_v28 = vld [vmem:[#allocation31_spill] sm:$0xff]  ;;  %v3115_v29 = vld [vmem:[#allocation32_spill] sm:$0xff] }
  0x57   :  { %1635 = vmatpush3.msra.mxu0 %v2052_v33  ;;  %1670 = vmatpush3.msra.mxu1 %v2057_v34  ;;  %v3116_v33 = vld [vmem:[#allocation33_spill] sm:$0xff]  ;;  %v3117_v34 = vld [vmem:[#allocation34_spill] sm:$0xff] }
  0x58   :  { %1636 = vmatprep.subr.mxu0 %v2064_v35  ;;  %1671 = vmatprep.subr.mxu1 %v2069_v36  ;;  %v3118_v35 = vld [vmem:[#allocation35_spill] sm:$0xff]  ;;  %v3119_v36 = vld [vmem:[#allocation36_spill] sm:$0xff] }
  0x59   :  { %1637 = vmatpush3.msra.mxu0 %v2076_v37  ;;  %1672 = vmatpush3.msra.mxu1 %v2081_v38  ;;  %v3120_v37 = vld [vmem:[#allocation37_spill] sm:$0xff]  ;;  %v3121_v38 = vld [vmem:[#allocation38_spill] sm:$0xff] }
  0x5a   :  { %1638 = vmatprep.subr.mxu0 %v2088_v39  ;;  %1673 = vmatprep.subr.mxu1 %v2093_v40  ;;  %v3122_v39 = vld [vmem:[#allocation39_spill] sm:$0xff]  ;;  %v3123_v40 = vld [vmem:[#allocation40_spill] sm:$0xff] }
  0x5b   :  { %1639 = vmatpush3.msra.mxu0 %v2100_v43  ;;  %1674 = vmatpush3.msra.mxu1 %v2105_v44  ;;  %v3124_v43 = vld [vmem:[#allocation41_spill] sm:$0xff]  ;;  %v3125_v44 = vld [vmem:[#allocation42_spill] sm:$0xff] }
  0x5c   :  { %1640 = vmatprep.subr.mxu0 %v2112_v45  ;;  %1675 = vmatprep.subr.mxu1 %v2117_v46  ;;  %v3126_v45 = vld [vmem:[#allocation43_spill] sm:$0xff]  ;;  %v3127_v46 = vld [vmem:[#allocation44_spill] sm:$0xff] }
  0x5d   :  { %1641 = vmatpush3.msra.mxu0 %v2124_v47  ;;  %1676 = vmatpush3.msra.mxu1 %v2129_v48  ;;  %v3128_v47 = vld [vmem:[#allocation45_spill] sm:$0xff]  ;;  %v3129_v48 = vld [vmem:[#allocation46_spill] sm:$0xff] }
  0x5e   :  { %1642 = vmatprep.subr.mxu0 %v2136_v49  ;;  %1677 = vmatprep.subr.mxu1 %v2141_v50  ;;  %v3130_v49 = vld [vmem:[#allocation47_spill] sm:$0xff]  ;;  %v3131_v50 = vld [vmem:[#allocation48_spill] sm:$0xff] }
  0x5f   :  { %1643 = vmatpush3.msra.mxu0 %v2150_v52  ;;  %1678 = vmatpush3.msra.mxu1 %v2155_v53  ;;  %v3132_v52 = vld [vmem:[#allocation49_spill] sm:$0xff]  ;;  %v3133_v53 = vld [vmem:[#allocation50_spill] sm:$0xff] }
  0x60   :  { %1644 = vmatprep.subr.mxu0 %v2165_v55  ;;  %1679 = vmatprep.subr.mxu1 %v2170_v56  ;;  %v3134_v55 = vld [vmem:[#allocation51_spill] sm:$0xff]  ;;  %v3135_v56 = vld [vmem:[#allocation52_spill] sm:$0xff] }
  0x61   :  { %1645 = vmatpush3.msra.mxu0 %v2177_v58  ;;  %1680 = vmatpush3.msra.mxu1 %v3092_v4  ;;  %v3136_v58 = vld [vmem:[#allocation53_spill] sm:$0xff]  ;;  %v3139_v4 = vld [vmem:[#allocation56_spill] sm:$0xff] }
  0x62   :  { %1646 = vmatprep.subr.mxu0 %v3093_v5  ;;  %1681 = vmatprep.subr.mxu1 %v3094_v6  ;;  %v3140_v5 = vld [vmem:[#allocation57_spill] sm:$0xff]  ;;  %v36_v6 = vld [vmem:[%s2937_s1 + $0x8] sm:$0xff] }
  0x63   :  { %1647 = vmatpush3.msra.mxu0 %v3095_v7  ;;  %1682 = vmatpush3.msra.mxu1 %v3096_v8  ;;  %v3141_v7 = vld [vmem:[#allocation58_spill] sm:$0xff]  ;;  %v3142_v8 = vld [vmem:[#allocation59_spill] sm:$0xff] }
  0x64   :  { %1648 = vmatprep.subr.mxu0 %v3097_v10  ;;  %1683 = vmatprep.subr.mxu1 %v3098_v11  ;;  %v3143_v10 = vld [vmem:[#allocation60_spill] sm:$0xff]  ;;  %v3144_v11 = vld [vmem:[#allocation61_spill] sm:$0xff] }
  0x65   :  { %1649 = vmatpush3.msra.mxu0 %v3099_v13  ;;  %1684 = vmatpush3.msra.mxu1 %v3100_v14  ;;  %v3145_v13 = vld [vmem:[#allocation62_spill] sm:$0xff]  ;;  %v3146_v14 = vld [vmem:[#allocation63_spill] sm:$0xff] }
  0x66   :  { %1650 = vmatprep.subr.mxu0 %v3101_v15  ;;  %1685 = vmatprep.subr.mxu1 %v3102_v16  ;;  %v508_v15 = vcombine.high %v36_v6, %v36_v6  ;;  %v3147_v16 = vld [vmem:[#allocation64_spill] sm:$0xff] }
  0x67   :  { %1651 = vmatpush3.msra.mxu0 %v3103_v17  ;;  %597 = vmatprep.mubr.f32.mxu0 %v2752_v9  ;;  %v3148_v17 = vld [vmem:[#allocation65_spill] sm:$0xff] }
  0x68   :  { %1686 = vmatpush3.msra.mxu1 %v3104_v18  ;;  %667 = vmatprep.mubr.f32.mxu1 %v2758_v12  ;;  %v3149_v18 = vld [vmem:[#allocation66_spill] sm:$0xff] }
  0x69   :  { %598 = vmatmul.mubr.f32.vlgmr.msra.gmra.mxu0 %v2737_v2  ;;  %668 = vmatmul.mubr.f32.vlgmr.msra.gmra.mxu1 %v2742_v3 }
  0x6a   :  { %1690 = vmatprep.subr.mxu0 %v3105_v19  ;;  %1725 = vmatprep.subr.mxu1 %v3106_v20  ;;  %v3150_v19 = vld [vmem:[#allocation67_spill] sm:$0xff]  ;;  %v3151_v20 = vld [vmem:[#allocation68_spill] sm:$0xff] }
  0x6b   :  { %1691 = vmatpush3.msra.mxu0 %v3107_v21  ;;  %1726 = vmatpush3.msra.mxu1 %v3108_v22  ;;  %v3152_v21 = vld [vmem:[#allocation69_spill] sm:$0xff]  ;;  %v2822_v22 = vrot.slane %v36_v6, %v2143_v51 }
  0x6c   :  { %1692 = vmatprep.subr.mxu0 %v3109_v23  ;;  %1727 = vmatprep.subr.mxu1 %v3110_v24  ;;  %v3153_v23 = vld [vmem:[#allocation70_spill] sm:$0xff]  ;;  %v3154_v24 = vld [vmem:[#allocation71_spill] sm:$0xff] }
  0x6d   :  { %1693 = vmatpush3.msra.mxu0 %v3111_v25  ;;  %1728 = vmatpush3.msra.mxu1 %v3112_v26  ;;  %v2827_v25 = vrot.slane %v508_v15, %v2143_v51  ;;  %v3155_v26 = vld [vmem:[#allocation72_spill] sm:$0xff] }
  0x6e   :  { %1694 = vmatprep.subr.mxu0 %v3113_v27  ;;  %1729 = vmatprep.subr.mxu1 %v3114_v28  ;;  %v3156_v27 = vld [vmem:[#allocation73_spill] sm:$0xff]  ;;  %v3157_v28 = vld [vmem:[#allocation74_spill] sm:$0xff] }
  0x6f   :  { %1695 = vmatpush3.msra.mxu0 %v3115_v29  ;;  %1730 = vmatpush3.msra.mxu1 %v3116_v33  ;;  %v3158_v29 = vld [vmem:[#allocation75_spill] sm:$0xff]  ;;  %v3159_v33 = vld [vmem:[#allocation76_spill] sm:$0xff] }
  0x70   :  { %1696 = vmatprep.subr.mxu0 %v3117_v34  ;;  %1731 = vmatprep.subr.mxu1 %v3118_v35  ;;  %v3160_v34 = vld [vmem:[#allocation77_spill] sm:$0xff]  ;;  %v2837_v35 = vcombine.high %v2822_v22, %v2822_v22 }
  0x71   :  { %1697 = vmatpush3.msra.mxu0 %v3119_v36  ;;  %1732 = vmatpush3.msra.mxu1 %v3120_v37  ;;  %v2843_v36 = vcombine.high %v2827_v25, %v2827_v25 }
  0x72   :  { %1698 = vmatprep.subr.mxu0 %v3121_v38  ;;  %1733 = vmatprep.subr.mxu1 %v3122_v39 }
  0x73   :  { %1699 = vmatpush3.msra.mxu0 %v3123_v40  ;;  %1734 = vmatpush3.msra.mxu1 %v3124_v43 }
  0x74   :  { %1700 = vmatprep.subr.mxu0 %v3125_v44  ;;  %1735 = vmatprep.subr.mxu1 %v3126_v45 }
  0x75   :  { %1701 = vmatpush3.msra.mxu0 %v3127_v46  ;;  %1736 = vmatpush3.msra.mxu1 %v3128_v47 }
  0x76   :  { %1702 = vmatprep.subr.mxu0 %v3129_v48  ;;  %1737 = vmatprep.subr.mxu1 %v3130_v49 }
  0x77   :  { %1703 = vmatpush3.msra.mxu0 %v3131_v50  ;;  %1738 = vmatpush3.msra.mxu1 %v3132_v52 }
  0x78   :  { %1704 = vmatprep.subr.mxu0 %v3133_v53  ;;  %1739 = vmatprep.subr.mxu1 %v3134_v55 }
  0x79   :  { %1705 = vmatpush3.msra.mxu0 %v3135_v56  ;;  %1740 = vmatpush3.msra.mxu1 %v3136_v58 }
  0x7a   :  { %1706 = vmatprep.subr.mxu0 %v3137_v0  ;;  %1741 = vmatprep.subr.mxu1 %v3138_v1 }
  0x7b   :  { %1707 = vmatpush3.msra.mxu0 %v3139_v4  ;;  %1742 = vmatpush3.msra.mxu1 %v3140_v5 }
  0x7c   :  { %1708 = vmatprep.subr.mxu0 %v3141_v7  ;;  %1743 = vmatprep.subr.mxu1 %v3142_v8 }
  0x7d   :  { %1709 = vmatpush3.msra.mxu0 %v3143_v10  ;;  %1744 = vmatpush3.msra.mxu1 %v3144_v11  ;;  %v978_v11 = vld [vmem:[%s2943_s7] sm:$0xf] }
  0x7e   :  { %1710 = vmatprep.subr.mxu0 %v3145_v13  ;;  %1745 = vmatprep.subr.mxu1 %v3146_v14 }
  0x7f   :  { %1711 = vmatpush3.msra.mxu0 %v3147_v16  ;;  %1746 = vmatpush3.msra.mxu1 %v3148_v17  ;;  %v1463_v16 = vld [vmem:[%s2942_s6] ss:$0 sm:$0xff] }
  0x80   :  { %1712 = vmatprep.subr.mxu0 %v3149_v18  ;;  %1747 = vmatprep.subr.mxu1 %v3150_v19 }
  0x81   :  { %1713 = vmatpush3.msra.mxu0 %v3151_v20  ;;  %1748 = vmatpush3.msra.mxu1 %v3152_v21  ;;  %v1068_v21 = vld [vmem:[%s2939_s3] sm:$0xff] }
  0x82   :  { %1714 = vmatprep.subr.mxu0 %v3153_v23  ;;  %1749 = vmatprep.subr.mxu1 %v3154_v24  ;;  %v1069_v23 = vld [vmem:[%s2939_s3 + $0x8] sm:$0xff]  ;;  %v1070_v24 = vld [vmem:[%s2939_s3 + $0x10] sm:$0xff] }
  0x83   :  { %1715 = vmatpush3.msra.mxu0 %v3155_v26  ;;  %1750 = vmatpush3.msra.mxu1 %v3156_v27  ;;  %v1076_v26 = vcombine.high %v1068_v21, %v1068_v21  ;;  %v1077_v27 = vcombine.high %v1069_v23, %v1069_v23 }
  0x84   :  { %1716 = vmatprep.subr.mxu0 %v3157_v28  ;;  %1751 = vmatprep.subr.mxu1 %v3158_v29  ;;  %v1078_v28 = vcombine.high %v1070_v24, %v1070_v24  ;;  %v1071_v29 = vld [vmem:[%s2939_s3 + $0x18] sm:$0xff]  ;;  %s1822_s3 = smov [#allocation2]  }
  0x85   :  { %1717 = vmatpush3.msra.mxu0 %v3159_v33  ;;  %1752 = vmatpush3.msra.mxu1 %v3160_v34  ;;  %v1079_v33 = vcombine.high %v1071_v29, %v1071_v29  ;;  %v1464_v34 = vld [vmem:[%s2944_s8] ss:$0 sm:$0xff]  ;;  %s1451_s8 = sshll.u32 %s1822_s3, 4  ;;  %s1452_s8 = int_to_ptr.vmem [resolvable:$true] %s1451_s8 }
  0x86   :  { %1718 = vmatprep.subr.mxu0 %v2621_v61  ;;  %1753 = vmatprep.subr.mxu1 %v2626_v54  ;;  %s1797_s30 = scalar_lea.vmem %s1452_s8, 256  ;;  %p1802_p1 = scmp.lt.s32.totalorder %s1452_s8, %s1452_s8 }
  0x87   :  { %1719 = vmatpush3.msra.mxu0 %v2636_v60  ;;  %1754 = vmatpush3.msra.mxu1 %v2641_v30  ;;  %v813_v60 = vld [vmem:[%s2940_s4] sm:$0xf]  ;;  %v1820_v30 = vmov 0.0   ;;  %p1798_p0 = scmp.ne.s32.totalorder %s1452_s8, %s1797_s30  ;;  %p1803_p2 = scmp.lt.s32.totalorder %s1797_s30, %s1797_s30 }
  0x88   :  { %1720 = vmatprep.subr.mxu0 %v2648_v57  ;;  %1755 = vmatprep.subr.mxu1 %v2653_v59  ;;  %v814_v59 = vld [vmem:[%s2941_s5] sm:$0xf] }
  0x89   :  { %1721 = vmatpush3.msra.mxu0 %v2664_v62  ;;  %737 = vmatprep.mubr.f32.mxu0 %v2837_v35  ;;  %p1804_p3 = por %p1803_p2, %p1802_p1 }
  0x8a   :  { %1756 = vmatpush3.msra.mxu1 %v2671_v31  ;;  %807 = vmatprep.mubr.f32.mxu1 %v2843_v36 }
  0x8b   :  { %738 = vmatmul.mubr.f32.vlgmr.msra.gmra.mxu0 %v2822_v22  ;;  %808 = vmatmul.mubr.f32.vlgmr.msra.gmra.mxu1 %v2827_v25  ;;  %p1805_p4 = pnand %p1804_p3, %p1798_p0 }
  0x8c   :  { %1771 = vmatprep.subr.mxu1 %v1820_v30  ;;  %1773 = vmatprep.mubr.msk.f32.mxu1 %vm1821_vm1, %v1820_v30 }
  0x8d   :  { %1772 = vmatpush3.msk.msra.mxu1 %vm819_vm0, %v813_v60  ;;  %1766 = vmatprep.subr.mxu0 %v1820_v30 }
  0x8e   :  { %1768 = vmatprep.mubr.msk.f32.mxu0 %vm1821_vm1, %v1820_v30  ;;  %1767 = vmatpush3.msk.msra.mxu0 %vm819_vm0, %v814_v59 }
  0x8f   :  { %1776 = vmatprep.subr.mxu0 %v1820_v30  ;;  %1468 = vmatprep.subr.msk.mxu1 %vm819_vm0, %v1076_v26 }
  0xe4   :  { %v1512_v62 = vpop.f32.mrf.mxu0 }
  0xe5   :  { %v1547_v31 = vpop.f32.mrf.mxu1 }
  0xe6   :  { %v1513_v54 = vpop.f32.mrf.mxu0 }
  0xe7   :  { %v1548_v61 = vpop.f32.mrf.mxu1  ;;  %v1514_v57 = vadd.f32 %v1513_v54, %v1512_v62 }
  0xe8   :  { %v1549_v37 = vadd.f32 %v1548_v61, %v1547_v31 }
  0xea   :  { %v346_v43 = vadd.f32 %v1549_v37, %v1514_v57 }
 0x106   :  { %v1582_v38 = vpop.f32.mrf.mxu0 }
 0x108   :  { %v1617_v39 = vpop.f32.mrf.mxu1  ;;  %v1583_v40 = vpop.f32.mrf.mxu0 }
 0x109   :  { %v1584_v44 = vadd.f32 %v1583_v40, %v1582_v38 }
 0x10a   :  { %v1618_v45 = vpop.f32.mrf.mxu1 }
 0x10b   :  { %v416_v46 = vadd.f32 %v1584_v44, %v346_v43  ;;  %v1619_v47 = vadd.f32 %v1618_v45, %v1617_v39 }
 0x10d   :  { %v486_v48 = vadd.f32 %v1619_v47, %v416_v46 }
 0x10f   :  { %1774 = vmatmul.mubr.msk.f32.vlgmr.msra.gmra.mxu1 %vm815_vm2, %v486_v48 }
 0x110   :  { %1163 = vmatprep.mubr.f32.mxu1 %v1820_v30  ;;  %1469 = vmatpush1.msk.msra.mxu1 %vm819_vm0, %v1068_v21 }
 0x111   :  { %1474 = vmatprep.subr.msk.mxu1 %vm819_vm0, %v1078_v28 }
 0x129   :  { %v1652_v49 = vpop.f32.mrf.mxu0  ;;  %v1687_v50 = vpop.f32.mrf.mxu1 }
 0x12b   :  { %v1653_v52 = vpop.f32.mrf.mxu0  ;;  %v1688_v53 = vpop.f32.mrf.mxu1 }
 0x12c   :  { %v1654_v55 = vadd.f32 %v1653_v52, %v1652_v49  ;;  %v1689_v56 = vadd.f32 %v1688_v53, %v1687_v50  ;;  %v3161_v49 = vld [vmem:[#allocation8_spill] sm:$0xff]  ;;  %v3162_v50 = vld [vmem:[#allocation11_spill] sm:$0xff]  ;;  %v3163_v53 = vld [vmem:[#allocation18_spill] sm:$0xff] }
 0x12e   :  { %v670_v5 = vadd.f32 %v1689_v56, %v1654_v55  ;;  %v3164_v56 = vld [vmem:[#allocation20_spill] sm:$0xff] }
 0x14b   :  { %v1722_v58 = vpop.f32.mrf.mxu0  ;;  %v1757_v0 = vpop.f32.mrf.mxu1 }
 0x14d   :  { %v1723_v1 = vpop.f32.mrf.mxu0  ;;  %v1758_v4 = vpop.f32.mrf.mxu1 }
 0x14e   :  { %v1724_v6 = vadd.f32 %v1723_v1, %v1722_v58  ;;  %v1759_v8 = vadd.f32 %v1758_v4, %v1757_v0 }
 0x150   :  { %v740_v7 = vadd.f32 %v1724_v6, %v670_v5 }
 0x152   :  { %v810_v10 = vadd.f32 %v1759_v8, %v740_v7 }
 0x154   :  { %1769 = vmatmul.mubr.msk.f32.vlgmr.msra.gmra.mxu0 %vm815_vm2, %v810_v10 }
 0x155   :  { %1778 = vmatprep.mubr.msk.f32.mxu0 %vm1821_vm1, %v1820_v30  ;;  %1777 = vmatpush3.msk.msra.mxu0 %vm819_vm0, %v978_v11 }
 0x156   :  { %1471 = vmatprep.subr.msk.mxu0 %vm819_vm0, %v1077_v27 }
 0x1cf   :  { %v965_v13 = vpop.f32.mrf.mxu1 }
 0x1d1   :  { %v1775_v14 = vpop.f32.mrf.mxu1 }
 0x214   :  { %v889_v15 = vpop.f32.mrf.mxu0 }
 0x215   :  { %v966_v17 = vadd.f32 %v965_v13, %v889_v15 }
 0x216   :  { %v1770_v18 = vpop.f32.mrf.mxu0 }
 0x217   :  { %v976_v19 = vadd.f32 %v1463_v16, %v966_v17 }
 0x219   :  { %v977_v20 = vmax.f32 %v976_v19, 0.0 }
 0x21b   :  { %1779 = vmatmul.mubr.msk.f32.vlgmr.msra.gmra.mxu0 %vm815_vm2, %v977_v20 }
 0x21c   :  { %1234 = vmatprep.mubr.f32.mxu0 %v1820_v30  ;;  %1472 = vmatpush1.msk.msra.mxu0 %vm819_vm0, %v1069_v23 }
 0x21d   :  { %1477 = vmatprep.subr.msk.mxu0 %vm819_vm0, %v1079_v33 }
 0x2db   :  { %v1058_v60 = vpop.f32.mrf.mxu0 }
 0x2dc   :  { %v1059_v59 = vadd.f32 %v1464_v34, %v1058_v60 }
 0x2dd   :  { %v1780_v62 = vpop.f32.mrf.mxu0 }
 0x2de   :  { %v1467_v31 = vmul.f32 -1.442695, %v1059_v59 }
 0x2e0   :  { %1793 = vpow2.f32 %v1467_v31 }
 0x2ed   :  { %v1794_v54 = vpop.eup %1793 }
 0x2ee   :  { %v1065_v61 = vadd.f32 1.0, %v1794_v54 }
 0x2f0   :  { %1795 = vrcp.f32 %v1065_v61 }
 0x2fd   :  { %v1796_v57 = vpop.eup %1795 }
 0x2fe   :  { %1470 = vmatmul.mubr.msk.f32.vlgmr.msra.gmra.mxu1 %vm815_vm2, %v1796_v57  ;;  %1473 = vmatmul.mubr.msk.f32.vlgmr.msra.gmra.mxu0 %vm815_vm2, %v1796_v57 }
 0x2ff   :  { %1475 = vmatpush1.msk.msra.mxu1 %vm819_vm0, %v1070_v24  ;;  %1478 = vmatpush1.msk.msra.mxu0 %vm819_vm0, %v1071_v29 }
 0x300   :  { %1305 = vmatprep.mubr.f32.mxu1 %v1820_v30  ;;  %1376 = vmatprep.mubr.f32.mxu0 %v1820_v30 }
 0x302   :  { %1476 = vmatmul.mubr.msk.f32.vlgmr.msra.gmra.mxu1 %vm815_vm2, %v1796_v57  ;;  %1479 = vmatmul.mubr.msk.f32.vlgmr.msra.gmra.mxu0 %vm815_vm2, %v1796_v57 }
 0x3be   :  { %v1165_v37 = vpop.f32.mrf.mxu1  ;;  %v1236_v38 = vpop.f32.mrf.mxu0 }
 0x3bf   :  { %v1383_v39 = vmul.f32 %v1165_v37, %v2737_v2  ;;  %v1385_v40 = vmul.f32 %v1236_v38, %v2742_v3 }
 0x3c0   :  { %v1167_v43 = vpop.f32.mrf.mxu1  ;;  %v1238_v44 = vpop.f32.mrf.mxu0 }
 0x3c1   :  { %v1384_v45 = vmul.f32 %v1167_v43, %v2752_v9  ;;  %v1386_v46 = vmul.f32 %v1238_v44, %v2758_v12  ;;  %v1391_v30 = vadd.f32 %v1383_v39, %v3161_v49  ;;  %v1393_v52 = vadd.f32 %v1385_v40, %v3162_v50 }
 0x3c2   :  { %v1307_v47 = vpop.f32.mrf.mxu1  ;;  %v1378_v48 = vpop.f32.mrf.mxu0 }
 0x3c3   :  { %v1392_v55 = vadd.f32 %v1384_v45, %v3163_v53  ;;  %v1394_v58 = vadd.f32 %v1386_v46, %v3164_v56  ;;  %v1387_v2 = vmul.f32 %v1307_v47, %v2822_v22  ;;  %v1389_v3 = vmul.f32 %v1378_v48, %v2827_v25 }
 0x3c4   :  { %v1309_v0 = vpop.f32.mrf.mxu1  ;;  %v1380_v1 = vpop.f32.mrf.mxu0 }
 0x3c5   :  { %v1407_v4 = vcombine.low %v1391_v30, %v1392_v55  ;;  %v1408_v9 = vcombine.low %v1393_v52, %v1394_v58  ;;  %v1388_v12 = vmul.f32 %v1309_v0, %v2837_v35  ;;  %v1390_v5 = vmul.f32 %v1380_v1, %v2843_v36 }
 0x3c6   :  { %v1395_v8 = vadd.f32 %v1387_v2, %v2602_v42  ;;  %v1397_v10 = vadd.f32 %v1389_v3, %v2629_v41 }
 0x3c7   :  { %v1415_v6 = vrot.slane %v1407_v4, %v2143_v51  ;;  %v1422_v7 = vrot.slane %v1408_v9, %v2143_v51  ;;  %v1396_v22 = vadd.f32 %v1388_v12, %v2657_v63  ;;  %v1398_v25 = vadd.f32 %v1390_v5, %v2675_v32 }
 0x3c9   :  { %v1423_v11 = vcombine.low %v1415_v6, %v1422_v7  ;;  %v1424_v13 = vcombine.low %v1395_v8, %v1396_v22  ;;  %v1425_v14 = vcombine.low %v1397_v10, %v1398_v25 }
 0x3cb   :  { %1443 = vst [vmem:[#allocation2] sm:$0xff] %v1423_v11  ;;  %v1432_v35 = vrot.slane %v1424_v13, %v2143_v51  ;;  %v1439_v36 = vrot.slane %v1425_v14, %v2143_v51 }
 0x3cd   :  { %v1440_v15 = vcombine.low %v1432_v35, %v1439_v36 }
 0x3cf   :  { %1444 = vst [vmem:[#allocation2 + $0x8] sm:$0xff] %v1440_v15 }
 0x3d0   :  { %1808 = shalt.err (!%p1805_p4)
}
 0x3d1   :  { %1454 = dma.vmem_to_hbm [thread:$0]  %s1452_s8, 256, %s2945_s9, [#allocation3]  }
 0x3d2   :  { %1817 = dma.done.wait [#allocation3], 256  }
 0x3d3   :  { %1818 = vsyncadd [#allocation3], 4294967040 }
 0x3d4   :  { %1458 = vsyncpa [#allocation3], 1 }

</bundles_post_ra>
